<compile_context>
chip_gen: v6e
topology: v6e:2x2x1
jax: 0.10.0
libtpu: 0.0.40
codegen_flags: <defaults>
</compile_context>

<pallas_src>
import functools

import jax
import jax.numpy as jnp
from jax.experimental import pallas as pl
from jax.experimental.pallas import tpu as pltpu


def _round_up(x, m):
    return ((x + m - 1) // m) * m


def _multicore_hint():
    # v4/v5p (megacore) and v7x have 2 TensorCores that share the "parallel" grid axis.
    try:
        kind = jax.devices()[0].device_kind.lower()
    except Exception:
        return False
    return any(tag in kind for tag in ("v4", "v5p", "v7"))


def _tile_footprint_bytes(tile_b, tile_n, d, cl, c, itemsize):
    """Rough per-step VMEM footprint used both to pick tile_n and to set vmem_limit."""
    streamed = 2 * 2 * tile_n * (d + cl) * itemsize        # featT + labT, double-buffered
    resident = 2 * tile_b * ((d + cl) * itemsize + c * 4)  # anchor features/labels/sup
    temps = 8 * tile_b * tile_n * 4                        # (TB, TN) f32 temporaries
    accs = 10 * tile_b * 128 * 4                           # lane-padded accumulators/out
    return streamed + resident + temps + accs


def _paco_loss_kernel(sup_ref, featb_ref, gt_ref, featT_ref, labT_ref, out_ref,
                      m_run, e_all, e_pos, s_all, s_pos, c_pos,
                      *, n_valid, n_extra, num_label_classes, tile_b,
                      alpha, beta, gamma, inv_supt, inv_temp, scale_out):
    k = pl.program_id(1)           # contrast-tile index (reduction axis, last)
    nt = pl.num_programs(1)
    CL = num_label_classes

    # ---------------- init accumulators at the start of every anchor tile's N sweep
    @pl.when(k == 0)
    def _():
        sup_part = sup_ref[...] * inv_supt                               # (TB, C) f32
        m_run[...] = jnp.max(sup_part, axis=1, keepdims=True)            # seed global max
        zeros = jnp.zeros((tile_b, 1), jnp.float32)
        e_all[...] = zeros
        e_pos[...] = zeros
        s_all[...] = zeros
        s_pos[...] = zeros
        c_pos[...] = zeros

    # ---------------- streamed (TB, TN) block: similarity logits + shared-label mask.
    # No iotas / valid masks / diagonal handling here: padded columns are exactly zero
    # and the self-contrast column is reconstructed analytically in the finalize.
    raw = jax.lax.dot_general(
        featb_ref[...], featT_ref[...], (((1,), (0,)), ((), ())),
        preferred_element_type=jnp.float32) * inv_temp                   # (TB, TN) f32
    lab = jax.lax.dot_general(
        gt_ref[...], labT_ref[...], (((1,), (0,)), ((), ())),
        preferred_element_type=jnp.float32)                              # (TB, TN) f32
    # {0,1} multi-hot labels -> lab is an exact small-integer overlap count, so
    # min(lab, 1) is exactly the shared-label indicator (1 VPU op, no compare+cast).
    posf = jnp.minimum(lab, 1.0)

    # online max + rescale of the exp accumulators (flash-style)
    m_new = jnp.maximum(m_run[...], jnp.max(raw, axis=1, keepdims=True))
    corr = jnp.exp(m_run[...] - m_new)
    p = jnp.exp(raw - m_new)
    e_all[...] = e_all[...] * corr + jnp.sum(p, axis=1, keepdims=True)
    e_pos[...] = e_pos[...] * corr + jnp.sum(p * posf, axis=1, keepdims=True)
    # max-free raw sums (the global shift is applied once at the end); padded
    # feature/label columns are exactly zero so they add nothing here.
    s_all[...] = s_all[...] + jnp.sum(raw, axis=1, keepdims=True)
    s_pos[...] = s_pos[...] + jnp.sum(raw * posf, axis=1, keepdims=True)
    c_pos[...] = c_pos[...] + jnp.sum(posf, axis=1, keepdims=True)
    m_run[...] = m_new

    # ---------------- finalize: fold in supervised columns, diagonal, padding; emit loss
    @pl.when(k == nt - 1)
    def _():
        sup_part = sup_ref[...] * inv_supt                               # (TB, C)
        gt = gt_ref[...].astype(jnp.float32)                             # (TB, CL)
        fb = featb_ref[...].astype(jnp.float32)                          # (TB, D)
        sup_cls = sup_part[:, :CL]                                       # class columns
        sup_none = sup_part[:, CL:CL + 1]                                # trailing "none" col

        m_f = m_run[...]
        # self-contrast (diagonal) terms, computed analytically from the resident anchor
        # block instead of being streamed: logit = ||f_i||^2 / T, overlap = has-a-label.
        r_diag = jnp.sum(fb * fb, axis=1, keepdims=True) * inv_temp
        gt_cnt = jnp.sum(gt, axis=1, keepdims=True)
        p_diag = (gt_cnt > 0.0).astype(jnp.float32)
        none = 1.0 - p_diag                                              # rows w/o positives
        e_d = jnp.exp(r_diag - m_f)

        # exact removal of the zero-padded contrast columns (raw == 0, last tile only)
        # from the exp accumulator.
        e_all_c = e_all[...]
        if n_extra:                                                      # static Python int
            e_all_c = e_all_c - float(n_extra) * jnp.exp(-m_f)

        # denominator: sum over logits_mask-selected columns of exp(logit - max)
        sum_e_m1 = (e_pos[...] - p_diag * e_d) + none * (e_all_c - e_d)
        z_adc = gamma * (e_all_c - sum_e_m1)
        gt_zero = (gt == 0.0).astype(jnp.float32)
        z_sup = (jnp.sum(jnp.exp(sup_cls - m_f) * gt_zero, axis=1, keepdims=True)
                 + (1.0 - none) * jnp.exp(sup_none - m_f))
        log_z = jnp.log(z_sup + z_adc + 1e-12)

        # positive-mask weighted raw sums and counts (diagonal & "none" rows folded in)
        sum_m1_raw = (s_pos[...] - p_diag * r_diag) + none * (s_all[...] - r_diag)
        sum_m1 = (c_pos[...] - p_diag) + none * float(n_valid - 1)

        num_raw = (beta * (jnp.sum(gt * sup_cls, axis=1, keepdims=True) + none * sup_none)
                   + alpha * sum_m1_raw)
        den = beta * (gt_cnt + none) + alpha * sum_m1

        loss_rows = scale_out * (num_raw - (m_f + log_z) * den) / den    # (TB, 1)
        # lane-dense, unmasked store: broadcast the per-anchor column across 128 lanes
        out_ref[...] = jnp.broadcast_to(loss_rows, (tile_b, 128))


def paco_loss_pallas(features, labels, sup_logits, *, K, alpha, beta=1.0, gamma=1.0,
                     supt=1.0, temperature=1.0, base_temperature=None,
                     tile_n_target=512, stream_buffers=None,
                     compute_dtype=jnp.bfloat16):
    base_temperature = temperature if base_temperature is None else base_temperature
    N, D = features.shape
    B = (N - K) // 2
    CL = labels.shape[1]
    C = sup_logits.shape[1]
    assert C == CL + 1, "sup_logits must have num_label_classes + 1 columns"
    assert B >= 1 and N >= B

    # ---- anchor (parallel) tiling: >=2 tiles on multi-core parts, large tiles otherwise
    min_anchor_tiles = 2 if _multicore_hint() else 1
    if B >= 256 * min_anchor_tiles:
        tile_b = 256
    elif B >= 128 * min_anchor_tiles:
        tile_b = 128
    else:
        tile_b = max(16, _round_up(-(-B // min_anchor_tiles), 16))      # bf16 sublane = 16
    b_pad = _round_up(B, tile_b)
    grid_b = b_pad // tile_b

    # ---- contrast (reduction) tiling: the largest multiple of 128 whose per-step
    # footprint fits the VMEM budget (footprint-based, not a chip-capacity threshold).
    itemsize = jnp.dtype(compute_dtype).itemsize
    tile_n = min(_round_up(N, 128), _round_up(max(int(tile_n_target), 128), 128))
    budget = 32 << 20
    while tile_n > 128 and _tile_footprint_bytes(tile_b, tile_n, D, CL, C, itemsize) > budget:
        tile_n -= 128
    n_pad = _round_up(N, tile_n)
    grid = (grid_b, n_pad // tile_n)
    n_extra = n_pad - N

    # ---- wrapper-side layout: bf16 MXU operands, big RHS pre-transposed, no label pad.
    # ({0,1} labels are exact in bf16; overlap counts accumulate exactly in f32.)
    f = features.astype(compute_dtype)
    l = labels.astype(compute_dtype)
    feat_b = jnp.pad(f[:B], ((0, b_pad - B), (0, 0)))                   # (b_pad, D)
    gt = jnp.pad(l[:B], ((0, b_pad - B), (0, 0)))                       # (b_pad, CL)
    featT = jnp.pad(f.T, ((0, 0), (0, n_pad - N)))                      # (D, n_pad)
    labT = jnp.pad(l.T, ((0, 0), (0, n_pad - N)))                       # (CL, n_pad)
    sup = jnp.pad(sup_logits.astype(jnp.float32), ((0, b_pad - B), (0, 0)))  # (b_pad, C)

    kernel = functools.partial(
        _paco_loss_kernel,
        n_valid=N, n_extra=n_extra, num_label_classes=CL, tile_b=tile_b,
        alpha=float(alpha), beta=float(beta), gamma=float(gamma),
        inv_supt=1.0 / float(supt), inv_temp=1.0 / float(temperature),
        scale_out=-(float(temperature) / float(base_temperature)))

    stream_kwargs = {}
    if stream_buffers is not None and int(stream_buffers) > 2:
        # e.g. 3 on v5e if a trace shows exposed DMA on the streamed operands
        stream_kwargs = dict(pipeline_mode=pl.Buffered(int(stream_buffers)))
    featT_spec = pl.BlockSpec((D, tile_n), lambda ib, k: (0, k), **stream_kwargs)
    labT_spec = pl.BlockSpec((CL, tile_n), lambda ib, k: (0, k), **stream_kwargs)

    footprint = _tile_footprint_bytes(tile_b, tile_n, D, CL, C, itemsize)
    vmem_bytes = int(min(max(footprint + (4 << 20), 16 << 20), 40 << 20))

    rows = pl.pallas_call(
        kernel,
        out_shape=jax.ShapeDtypeStruct((b_pad, 128), jnp.float32),
        grid_spec=pltpu.PrefetchScalarGridSpec(
            num_scalar_prefetch=0,
            grid=grid,
            in_specs=[
                pl.BlockSpec((tile_b, C), lambda ib, k: (ib, 0)),       # sup_logits (resident)
                pl.BlockSpec((tile_b, D), lambda ib, k: (ib, 0)),       # anchor features
                pl.BlockSpec((tile_b, CL), lambda ib, k: (ib, 0)),      # anchor labels
                featT_spec,                                             # features^T (streamed)
                labT_spec,                                              # labels^T (streamed)
            ],
            out_specs=pl.BlockSpec((tile_b, 128), lambda ib, k: (ib, 0)),
            scratch_shapes=[pltpu.VMEM((tile_b, 1), jnp.float32) for _ in range(6)],
        ),
        compiler_params=pltpu.CompilerParams(
            dimension_semantics=("parallel", "arbitrary"),
            vmem_limit_bytes=vmem_bytes),
    )(sup, feat_b, gt, featT, labT)

    # trivial O(B) epilogue in JAX glue so the anchor grid axis can stay "parallel"
    return jnp.mean(rows[:B, 0])


def paco_loss_ref(features, labels, sup_logits, *, K, alpha, beta=1.0,
                  gamma=1.0, supt=1.0, temperature=1.0, base_temperature=None):
    """Pure-JAX f32 port of the PyTorch forward (reference for validation)."""
    base_temperature = temperature if base_temperature is None else base_temperature
    B = (features.shape[0] - K) // 2
    mask = (labels[:B] @ labels.T > 0.0).astype(jnp.float32)
    adc = (features[:B] @ features.T) / temperature
    adc = jnp.concatenate([sup_logits / supt, adc], axis=1)
    logits = adc - jnp.max(adc, axis=1, keepdims=True)
    logits_mask = jnp.ones_like(mask).at[jnp.arange(B), jnp.arange(B)].set(0.0)
    none_mask = (mask.sum(1) == 0.0).astype(jnp.float32)[:, None]
    mask = jnp.where(none_mask.astype(bool), 1.0, mask)
    mask = mask * logits_mask
    neg_mask = (mask == 0.0).astype(jnp.float32)
    gt_labels = labels[:B]
    mask = jnp.concatenate([gt_labels * beta, none_mask * beta, mask * alpha], axis=1)
    logits_mask = jnp.concatenate([(gt_labels == 0.0).astype(jnp.float32),
                                   (none_mask == 0.0).astype(jnp.float32),
                                   gamma * neg_mask], axis=1)
    exp_logits = jnp.exp(logits) * logits_mask
    log_prob = logits - jnp.log(exp_logits.sum(1, keepdims=True) + 1e-12)
    mean_log_prob_pos = (mask * log_prob).sum(1) / mask.sum(1)
    return (-(temperature / base_temperature) * mean_log_prob_pos).mean()


if __name__ == "__main__":
    # Small shapes consistent with the forward (N = 2*B + K).  B=6 exercises the
    # anchor-row padding path; tile_n_target=128 with N=212 exercises multi-tile online
    # softmax, the analytic padded-column correction and the analytic diagonal terms.
    B, K, D, CL = 6, 200, 32, 15
    N, C = 2 * B + K, CL + 1
    alpha, beta, gamma, supt, temperature = 0.05, 1.0, 1.0, 1.0, 0.2

    key = jax.random.PRNGKey(0)
    kf, kl, ks = jax.random.split(key, 3)
    features = jax.random.normal(kf, (N, D), jnp.float32)
    features = features / jnp.linalg.norm(features, axis=1, keepdims=True)
    labels = (jax.random.uniform(kl, (N, CL)) < 0.2).astype(jnp.float32)
    sup_logits = jax.random.normal(ks, (B, C), jnp.float32)

    loss = paco_loss_pallas(features, labels, sup_logits, K=K, alpha=alpha,
                            beta=beta, gamma=gamma, supt=supt,
                            temperature=temperature, tile_n_target=128)
    loss = jax.block_until_ready(loss)

    ref = paco_loss_ref(features, labels, sup_logits, K=K, alpha=alpha,
                        beta=beta, gamma=gamma, supt=supt,
                        temperature=temperature)
    ref = jax.block_until_ready(ref)

    assert bool(jnp.isfinite(loss)), f"non-finite loss: {loss}"
    # tolerance accounts for bf16 MXU inputs vs the pure-f32 reference
    tol = 2e-2 * (1.0 + float(jnp.abs(ref)))
    assert float(jnp.abs(loss - ref)) < tol, (float(loss), float(ref), tol)
    print("KERNEL_OK")
</pallas_src>

<mosaic_0001>
module attributes {stable_mosaic.version = 11 : i64} {
  func.func @_paco_loss_kernel(%arg0: i32, %arg1: i32, %arg2: memref<16x16xf32, #tpu.memory_space<vmem>>, %arg3: memref<16x32xbf16, #tpu.memory_space<vmem>>, %arg4: memref<16x15xbf16, #tpu.memory_space<vmem>>, %arg5: memref<32x128xbf16, #tpu.memory_space<vmem>>, %arg6: memref<15x128xbf16, #tpu.memory_space<vmem>>, %arg7: memref<16x128xf32, #tpu.memory_space<vmem>>, %arg8: memref<16x1xf32, #tpu.memory_space<vmem>>, %arg9: memref<16x1xf32, #tpu.memory_space<vmem>>, %arg10: memref<16x1xf32, #tpu.memory_space<vmem>>, %arg11: memref<16x1xf32, #tpu.memory_space<vmem>>, %arg12: memref<16x1xf32, #tpu.memory_space<vmem>>, %arg13: memref<16x1xf32, #tpu.memory_space<vmem>>) attributes {dimension_semantics = [#tpu.dimension_semantics<parallel>, #tpu.dimension_semantics<arbitrary>], iteration_bounds = array<i64: 1, 2>, scalar_prefetch = 0 : i64, scratch_operands = 6 : i64, tpu.core_type = #tpu.core_type<tc>, window_params = [{transform_indices = @transform_0, window_bounds = array<i64: 16, 16>}, {transform_indices = @transform_1, window_bounds = array<i64: 16, 32>}, {transform_indices = @transform_2, window_bounds = array<i64: 16, 15>}, {transform_indices = @transform_3, window_bounds = array<i64: 32, 128>}, {transform_indices = @transform_4, window_bounds = array<i64: 15, 128>}, {transform_indices = @transform_5, window_bounds = array<i64: 16, 128>}]} {
    %c0_i32 = arith.constant 0 : i32
    %0 = arith.cmpi eq, %arg1, %c0_i32 : i32
    %1 = arith.extui %0 : i1 to i32
    %c0_i32_0 = arith.constant 0 : i32
    %2 = arith.cmpi ne, %1, %c0_i32_0 : i32
    scf.if %2 {
      %c0_44 = arith.constant 0 : index
      %c0_45 = arith.constant 0 : index
      %56 = vector.load %arg2[%c0_44, %c0_45] : memref<16x16xf32, #tpu.memory_space<vmem>>, vector<16x16xf32>
      %cst_46 = arith.constant 1.000000e+00 : f32
      %57 = vector.broadcast %cst_46 : f32 to vector<16x16xf32>
      %58 = arith.mulf %56, %57 : vector<16x16xf32>
      %cst_47 = arith.constant dense<0xFF800000> : vector<16xf32>
      %59 = vector.multi_reduction <maximumf>, %58, %cst_47 [1] : vector<16x16xf32> to vector<16xf32>
      %60 = vector.shape_cast %59 : vector<16xf32> to vector<16x1xf32>
      %c0_48 = arith.constant 0 : index
      %c0_49 = arith.constant 0 : index
      %61 = vector.load %arg8[%c0_48, %c0_49] : memref<16x1xf32, #tpu.memory_space<vmem>>, vector<16x1xf32>
      tpu.vector_store %arg8[%c0_48, %c0_49], %60 {strides = array<i32>} : memref<16x1xf32, #tpu.memory_space<vmem>>, vector<16x1xf32>,
      %cst_50 = arith.constant 0.000000e+00 : f32
      %62 = vector.broadcast %cst_50 : f32 to vector<16x1xf32>
      %c0_51 = arith.constant 0 : index
      %c0_52 = arith.constant 0 : index
      %63 = vector.load %arg9[%c0_51, %c0_52] : memref<16x1xf32, #tpu.memory_space<vmem>>, vector<16x1xf32>
      tpu.vector_store %arg9[%c0_51, %c0_52], %62 {strides = array<i32>} : memref<16x1xf32, #tpu.memory_space<vmem>>, vector<16x1xf32>,
      %c0_53 = arith.constant 0 : index
      %c0_54 = arith.constant 0 : index
      %64 = vector.load %arg10[%c0_53, %c0_54] : memref<16x1xf32, #tpu.memory_space<vmem>>, vector<16x1xf32>
      tpu.vector_store %arg10[%c0_53, %c0_54], %62 {strides = array<i32>} : memref<16x1xf32, #tpu.memory_space<vmem>>, vector<16x1xf32>,
      %c0_55 = arith.constant 0 : index
      %c0_56 = arith.constant 0 : index
      %65 = vector.load %arg11[%c0_55, %c0_56] : memref<16x1xf32, #tpu.memory_space<vmem>>, vector<16x1xf32>
      tpu.vector_store %arg11[%c0_55, %c0_56], %62 {strides = array<i32>} : memref<16x1xf32, #tpu.memory_space<vmem>>, vector<16x1xf32>,
      %c0_57 = arith.constant 0 : index
      %c0_58 = arith.constant 0 : index
      %66 = vector.load %arg12[%c0_57, %c0_58] : memref<16x1xf32, #tpu.memory_space<vmem>>, vector<16x1xf32>
      tpu.vector_store %arg12[%c0_57, %c0_58], %62 {strides = array<i32>} : memref<16x1xf32, #tpu.memory_space<vmem>>, vector<16x1xf32>,
      %c0_59 = arith.constant 0 : index
      %c0_60 = arith.constant 0 : index
      %67 = vector.load %arg13[%c0_59, %c0_60] : memref<16x1xf32, #tpu.memory_space<vmem>>, vector<16x1xf32>
      tpu.vector_store %arg13[%c0_59, %c0_60], %62 {strides = array<i32>} : memref<16x1xf32, #tpu.memory_space<vmem>>, vector<16x1xf32>,
    } else {
    }
    %c0 = arith.constant 0 : index
    %c0_1 = arith.constant 0 : index
    %3 = vector.load %arg3[%c0, %c0_1] : memref<16x32xbf16, #tpu.memory_space<vmem>>, vector<16x32xbf16>
    %c0_2 = arith.constant 0 : index
    %c0_3 = arith.constant 0 : index
    %4 = vector.load %arg5[%c0_2, %c0_3] : memref<32x128xbf16, #tpu.memory_space<vmem>>, vector<32x128xbf16>
    %cst = arith.constant dense<0.000000e+00> : vector<16x128xf32>
    %5 = tpu.matmul %3, %4, %cst {dimension_numbers = #tpu.dot_dimension_numbers<[1], [0], [0], [1], [0, 0, 1, 1], [], []>} : vector<16x32xbf16>, vector<32x128xbf16>, vector<16x128xf32> -> vector<16x128xf32>
    %cst_4 = arith.constant 5.000000e+00 : f32
    %6 = vector.broadcast %cst_4 : f32 to vector<16x128xf32>
    %7 = arith.mulf %5, %6 : vector<16x128xf32>
    %c0_5 = arith.constant 0 : index
    %c0_6 = arith.constant 0 : index
    %8 = vector.load %arg4[%c0_5, %c0_6] : memref<16x15xbf16, #tpu.memory_space<vmem>>, vector<16x15xbf16>
    %c0_7 = arith.constant 0 : index
    %c0_8 = arith.constant 0 : index
    %9 = vector.load %arg6[%c0_7, %c0_8] : memref<15x128xbf16, #tpu.memory_space<vmem>>, vector<15x128xbf16>
    %cst_9 = arith.constant dense<0.000000e+00> : vector<16x128xf32>
    %10 = tpu.matmul %8, %9, %cst_9 {dimension_numbers = #tpu.dot_dimension_numbers<[1], [0], [0], [1], [0, 0, 1, 1], [], []>} : vector<16x15xbf16>, vector<15x128xbf16>, vector<16x128xf32> -> vector<16x128xf32>
    %cst_10 = arith.constant 1.000000e+00 : f32
    %11 = vector.broadcast %cst_10 : f32 to vector<16x128xf32>
    %12 = arith.minimumf %10, %11 : vector<16x128xf32>
    %c0_11 = arith.constant 0 : index
    %c0_12 = arith.constant 0 : index
    %13 = vector.load %arg8[%c0_11, %c0_12] : memref<16x1xf32, #tpu.memory_space<vmem>>, vector<16x1xf32>
    %cst_13 = arith.constant dense<0xFF800000> : vector<16xf32>
    %14 = vector.multi_reduction <maximumf>, %7, %cst_13 [1] : vector<16x128xf32> to vector<16xf32>
    %15 = vector.shape_cast %14 : vector<16xf32> to vector<16x1xf32>
    %16 = arith.maximumf %13, %15 : vector<16x1xf32>
    %c0_14 = arith.constant 0 : index
    %c0_15 = arith.constant 0 : index
    %17 = vector.load %arg8[%c0_14, %c0_15] : memref<16x1xf32, #tpu.memory_space<vmem>>, vector<16x1xf32>
    %18 = arith.subf %17, %16 : vector<16x1xf32>
    %19 = math.exp %18 : vector<16x1xf32>
    %20 = vector.broadcast %16 : vector<16x1xf32> to vector<16x128xf32>
    %21 = arith.subf %7, %20 : vector<16x128xf32>
    %22 = math.exp %21 : vector<16x128xf32>
    %c0_16 = arith.constant 0 : index
    %c0_17 = arith.constant 0 : index
    %23 = vector.load %arg9[%c0_16, %c0_17] : memref<16x1xf32, #tpu.memory_space<vmem>>, vector<16x1xf32>
    %24 = arith.mulf %23, %19 : vector<16x1xf32>
    %cst_18 = arith.constant dense<0.000000e+00> : vector<16xf32>
    %25 = vector.multi_reduction <add>, %22, %cst_18 [1] : vector<16x128xf32> to vector<16xf32>
    %26 = vector.shape_cast %25 : vector<16xf32> to vector<16x1xf32>
    %27 = arith.addf %24, %26 : vector<16x1xf32>
    %c0_19 = arith.constant 0 : index
    %c0_20 = arith.constant 0 : index
    %28 = vector.load %arg9[%c0_19, %c0_20] : memref<16x1xf32, #tpu.memory_space<vmem>>, vector<16x1xf32>
    tpu.vector_store %arg9[%c0_19, %c0_20], %27 {strides = array<i32>} : memref<16x1xf32, #tpu.memory_space<vmem>>, vector<16x1xf32>,
    %c0_21 = arith.constant 0 : index
    %c0_22 = arith.constant 0 : index
    %29 = vector.load %arg10[%c0_21, %c0_22] : memref<16x1xf32, #tpu.memory_space<vmem>>, vector<16x1xf32>
    %30 = arith.mulf %29, %19 : vector<16x1xf32>
    %31 = arith.mulf %22, %12 : vector<16x128xf32>
    %cst_23 = arith.constant dense<0.000000e+00> : vector<16xf32>
    %32 = vector.multi_reduction <add>, %31, %cst_23 [1] : vector<16x128xf32> to vector<16xf32>
    %33 = vector.shape_cast %32 : vector<16xf32> to vector<16x1xf32>
    %34 = arith.addf %30, %33 : vector<16x1xf32>
    %c0_24 = arith.constant 0 : index
    %c0_25 = arith.constant 0 : index
    %35 = vector.load %arg10[%c0_24, %c0_25] : memref<16x1xf32, #tpu.memory_space<vmem>>, vector<16x1xf32>
    tpu.vector_store %arg10[%c0_24, %c0_25], %34 {strides = array<i32>} : memref<16x1xf32, #tpu.memory_space<vmem>>, vector<16x1xf32>,
    %c0_26 = arith.constant 0 : index
    %c0_27 = arith.constant 0 : index
    %36 = vector.load %arg11[%c0_26, %c0_27] : memref<16x1xf32, #tpu.memory_space<vmem>>, vector<16x1xf32>
    %cst_28 = arith.constant dense<0.000000e+00> : vector<16xf32>
    %37 = vector.multi_reduction <add>, %7, %cst_28 [1] : vector<16x128xf32> to vector<16xf32>
    %38 = vector.shape_cast %37 : vector<16xf32> to vector<16x1xf32>
    %39 = arith.addf %36, %38 : vector<16x1xf32>
    %c0_29 = arith.constant 0 : index
    %c0_30 = arith.constant 0 : index
    %40 = vector.load %arg11[%c0_29, %c0_30] : memref<16x1xf32, #tpu.memory_space<vmem>>, vector<16x1xf32>
    tpu.vector_store %arg11[%c0_29, %c0_30], %39 {strides = array<i32>} : memref<16x1xf32, #tpu.memory_space<vmem>>, vector<16x1xf32>,
    %c0_31 = arith.constant 0 : index
    %c0_32 = arith.constant 0 : index
    %41 = vector.load %arg12[%c0_31, %c0_32] : memref<16x1xf32, #tpu.memory_space<vmem>>, vector<16x1xf32>
    %42 = arith.mulf %7, %12 : vector<16x128xf32>
    %cst_33 = arith.constant dense<0.000000e+00> : vector<16xf32>
    %43 = vector.multi_reduction <add>, %42, %cst_33 [1] : vector<16x128xf32> to vector<16xf32>
    %44 = vector.shape_cast %43 : vector<16xf32> to vector<16x1xf32>
    %45 = arith.addf %41, %44 : vector<16x1xf32>
    %c0_34 = arith.constant 0 : index
    %c0_35 = arith.constant 0 : index
    %46 = vector.load %arg12[%c0_34, %c0_35] : memref<16x1xf32, #tpu.memory_space<vmem>>, vector<16x1xf32>
    tpu.vector_store %arg12[%c0_34, %c0_35], %45 {strides = array<i32>} : memref<16x1xf32, #tpu.memory_space<vmem>>, vector<16x1xf32>,
    %c0_36 = arith.constant 0 : index
    %c0_37 = arith.constant 0 : index
    %47 = vector.load %arg13[%c0_36, %c0_37] : memref<16x1xf32, #tpu.memory_space<vmem>>, vector<16x1xf32>
    %cst_38 = arith.constant dense<0.000000e+00> : vector<16xf32>
    %48 = vector.multi_reduction <add>, %12, %cst_38 [1] : vector<16x128xf32> to vector<16xf32>
    %49 = vector.shape_cast %48 : vector<16xf32> to vector<16x1xf32>
    %50 = arith.addf %47, %49 : vector<16x1xf32>
    %c0_39 = arith.constant 0 : index
    %c0_40 = arith.constant 0 : index
    %51 = vector.load %arg13[%c0_39, %c0_40] : memref<16x1xf32, #tpu.memory_space<vmem>>, vector<16x1xf32>
    tpu.vector_store %arg13[%c0_39, %c0_40], %50 {strides = array<i32>} : memref<16x1xf32, #tpu.memory_space<vmem>>, vector<16x1xf32>,
    %c0_41 = arith.constant 0 : index
    %c0_42 = arith.constant 0 : index
    %52 = vector.load %arg8[%c0_41, %c0_42] : memref<16x1xf32, #tpu.memory_space<vmem>>, vector<16x1xf32>
    tpu.vector_store %arg8[%c0_41, %c0_42], %16 {strides = array<i32>} : memref<16x1xf32, #tpu.memory_space<vmem>>, vector<16x1xf32>,
    %c1_i32 = arith.constant 1 : i32
    %53 = arith.cmpi eq, %arg1, %c1_i32 : i32
    %54 = arith.extui %53 : i1 to i32
    %c0_i32_43 = arith.constant 0 : i32
    %55 = arith.cmpi ne, %54, %c0_i32_43 : i32
    scf.if %55 {
      %c0_44 = arith.constant 0 : index
      %c0_45 = arith.constant 0 : index
      %56 = vector.load %arg2[%c0_44, %c0_45] : memref<16x16xf32, #tpu.memory_space<vmem>>, vector<16x16xf32>
      %cst_46 = arith.constant 1.000000e+00 : f32
      %57 = vector.broadcast %cst_46 : f32 to vector<16x16xf32>
      %58 = arith.mulf %56, %57 : vector<16x16xf32>
      %c0_47 = arith.constant 0 : index
      %c0_48 = arith.constant 0 : index
      %59 = vector.load %arg4[%c0_47, %c0_48] : memref<16x15xbf16, #tpu.memory_space<vmem>>, vector<16x15xbf16>
      %60 = arith.extf %59 : vector<16x15xbf16> to vector<16x15xf32>
      %c0_49 = arith.constant 0 : index
      %c0_50 = arith.constant 0 : index
      %61 = vector.load %arg3[%c0_49, %c0_50] : memref<16x32xbf16, #tpu.memory_space<vmem>>, vector<16x32xbf16>
      %62 = arith.extf %61 : vector<16x32xbf16> to vector<16x32xf32>
      %63 = vector.extract_strided_slice %58 {offsets = [0, 0], sizes = [16, 15], strides = [1, 1]} : vector<16x16xf32> to vector<16x15xf32>
      %64 = vector.extract_strided_slice %58 {offsets = [0, 15], sizes = [16, 1], strides = [1, 1]} : vector<16x16xf32> to vector<16x1xf32>
      %c0_51 = arith.constant 0 : index
      %c0_52 = arith.constant 0 : index
      %65 = vector.load %arg8[%c0_51, %c0_52] : memref<16x1xf32, #tpu.memory_space<vmem>>, vector<16x1xf32>
      %66 = arith.mulf %62, %62 : vector<16x32xf32>
      %cst_53 = arith.constant dense<0.000000e+00> : vector<16xf32>
      %67 = vector.multi_reduction <add>, %66, %cst_53 [1] : vector<16x32xf32> to vector<16xf32>
      %68 = vector.shape_cast %67 : vector<16xf32> to vector<16x1xf32>
      %cst_54 = arith.constant 5.000000e+00 : f32
      %69 = vector.broadcast %cst_54 : f32 to vector<16x1xf32>
      %70 = arith.mulf %68, %69 : vector<16x1xf32>
      %cst_55 = arith.constant dense<0.000000e+00> : vector<16xf32>
      %71 = vector.multi_reduction <add>, %60, %cst_55 [1] : vector<16x15xf32> to vector<16xf32>
      %72 = vector.shape_cast %71 : vector<16xf32> to vector<16x1xf32>
      %cst_56 = arith.constant 0.000000e+00 : f32
      %73 = vector.broadcast %cst_56 : f32 to vector<16x1xf32>
      %74 = arith.cmpf ogt, %72, %73 : vector<16x1xf32>
      %75 = arith.extui %74 : vector<16x1xi1> to vector<16x1xi32>
      %76 = arith.sitofp %75 : vector<16x1xi32> to vector<16x1xf32>
      %cst_57 = arith.constant 1.000000e+00 : f32
      %77 = vector.broadcast %cst_57 : f32 to vector<16x1xf32>
      %78 = arith.subf %77, %76 : vector<16x1xf32>
      %79 = arith.subf %70, %65 : vector<16x1xf32>
      %80 = math.exp %79 : vector<16x1xf32>
      %c0_58 = arith.constant 0 : index
      %c0_59 = arith.constant 0 : index
      %81 = vector.load %arg9[%c0_58, %c0_59] : memref<16x1xf32, #tpu.memory_space<vmem>>, vector<16x1xf32>
      %cst_60 = arith.constant 0.000000e+00 : f32
      %82 = vector.broadcast %cst_60 : f32 to vector<16x1xf32>
      %83 = arith.subf %82, %65 : vector<16x1xf32>
      %84 = math.exp %83 : vector<16x1xf32>
      %cst_61 = arith.constant 4.400000e+01 : f32
      %85 = vector.broadcast %cst_61 : f32 to vector<16x1xf32>
      %86 = arith.mulf %85, %84 : vector<16x1xf32>
      %87 = arith.subf %81, %86 : vector<16x1xf32>
      %c0_62 = arith.constant 0 : index
      %c0_63 = arith.constant 0 : index
      %88 = vector.load %arg10[%c0_62, %c0_63] : memref<16x1xf32, #tpu.memory_space<vmem>>, vector<16x1xf32>
      %89 = arith.mulf %76, %80 : vector<16x1xf32>
      %90 = arith.subf %88, %89 : vector<16x1xf32>
      %91 = arith.subf %87, %80 : vector<16x1xf32>
      %92 = arith.mulf %78, %91 : vector<16x1xf32>
      %93 = arith.addf %90, %92 : vector<16x1xf32>
      %94 = arith.subf %87, %93 : vector<16x1xf32>
      %cst_64 = arith.constant 1.000000e+00 : f32
      %95 = vector.broadcast %cst_64 : f32 to vector<16x1xf32>
      %96 = arith.mulf %95, %94 : vector<16x1xf32>
      %cst_65 = arith.constant 0.000000e+00 : f32
      %97 = vector.broadcast %cst_65 : f32 to vector<16x15xf32>
      %98 = arith.cmpf oeq, %60, %97 : vector<16x15xf32>
      %99 = arith.extui %98 : vector<16x15xi1> to vector<16x15xi32>
      %100 = arith.sitofp %99 : vector<16x15xi32> to vector<16x15xf32>
      %101 = vector.broadcast %65 : vector<16x1xf32> to vector<16x15xf32>
      %102 = arith.subf %63, %101 : vector<16x15xf32>
      %103 = math.exp %102 : vector<16x15xf32>
      %104 = arith.mulf %103, %100 : vector<16x15xf32>
      %cst_66 = arith.constant dense<0.000000e+00> : vector<16xf32>
      %105 = vector.multi_reduction <add>, %104, %cst_66 [1] : vector<16x15xf32> to vector<16xf32>
      %106 = vector.shape_cast %105 : vector<16xf32> to vector<16x1xf32>
      %cst_67 = arith.constant 1.000000e+00 : f32
      %107 = vector.broadcast %cst_67 : f32 to vector<16x1xf32>
      %108 = arith.subf %107, %78 : vector<16x1xf32>
      %109 = arith.subf %64, %65 : vector<16x1xf32>
      %110 = math.exp %109 : vector<16x1xf32>
      %111 = arith.mulf %108, %110 : vector<16x1xf32>
      %112 = arith.addf %106, %111 : vector<16x1xf32>
      %113 = arith.addf %112, %96 : vector<16x1xf32>
      %cst_68 = arith.constant 9.99999996E-13 : f32
      %114 = vector.broadcast %cst_68 : f32 to vector<16x1xf32>
      %115 = arith.addf %113, %114 : vector<16x1xf32>
      %116 = math.log %115 : vector<16x1xf32>
      %c0_69 = arith.constant 0 : index
      %c0_70 = arith.constant 0 : index
      %117 = vector.load %arg12[%c0_69, %c0_70] : memref<16x1xf32, #tpu.memory_space<vmem>>, vector<16x1xf32>
      %118 = arith.mulf %76, %70 : vector<16x1xf32>
      %119 = arith.subf %117, %118 : vector<16x1xf32>
      %c0_71 = arith.constant 0 : index
      %c0_72 = arith.constant 0 : index
      %120 = vector.load %arg11[%c0_71, %c0_72] : memref<16x1xf32, #tpu.memory_space<vmem>>, vector<16x1xf32>
      %121 = arith.subf %120, %70 : vector<16x1xf32>
      %122 = arith.mulf %78, %121 : vector<16x1xf32>
      %123 = arith.addf %119, %122 : vector<16x1xf32>
      %c0_73 = arith.constant 0 : index
      %c0_74 = arith.constant 0 : index
      %124 = vector.load %arg13[%c0_73, %c0_74] : memref<16x1xf32, #tpu.memory_space<vmem>>, vector<16x1xf32>
      %125 = arith.subf %124, %76 : vector<16x1xf32>
      %cst_75 = arith.constant 2.110000e+02 : f32
      %126 = vector.broadcast %cst_75 : f32 to vector<16x1xf32>
      %127 = arith.mulf %78, %126 : vector<16x1xf32>
      %128 = arith.addf %125, %127 : vector<16x1xf32>
      %129 = arith.mulf %60, %63 : vector<16x15xf32>
      %cst_76 = arith.constant dense<0.000000e+00> : vector<16xf32>
      %130 = vector.multi_reduction <add>, %129, %cst_76 [1] : vector<16x15xf32> to vector<16xf32>
      %131 = vector.shape_cast %130 : vector<16xf32> to vector<16x1xf32>
      %132 = arith.mulf %78, %64 : vector<16x1xf32>
      %133 = arith.addf %131, %132 : vector<16x1xf32>
      %cst_77 = arith.constant 1.000000e+00 : f32
      %134 = vector.broadcast %cst_77 : f32 to vector<16x1xf32>
      %135 = arith.mulf %134, %133 : vector<16x1xf32>
      %cst_78 = arith.constant 5.000000e-02 : f32
      %136 = vector.broadcast %cst_78 : f32 to vector<16x1xf32>
      %137 = arith.mulf %136, %123 : vector<16x1xf32>
      %138 = arith.addf %135, %137 : vector<16x1xf32>
      %139 = arith.addf %72, %78 : vector<16x1xf32>
      %cst_79 = arith.constant 1.000000e+00 : f32
      %140 = vector.broadcast %cst_79 : f32 to vector<16x1xf32>
      %141 = arith.mulf %140, %139 : vector<16x1xf32>
      %cst_80 = arith.constant 5.000000e-02 : f32
      %142 = vector.broadcast %cst_80 : f32 to vector<16x1xf32>
      %143 = arith.mulf %142, %128 : vector<16x1xf32>
      %144 = arith.addf %141, %143 : vector<16x1xf32>
      %145 = arith.addf %65, %116 : vector<16x1xf32>
      %146 = arith.mulf %145, %144 : vector<16x1xf32>
      %147 = arith.subf %138, %146 : vector<16x1xf32>
      %cst_81 = arith.constant -1.000000e+00 : f32
      %148 = vector.broadcast %cst_81 : f32 to vector<16x1xf32>
      %149 = arith.mulf %148, %147 : vector<16x1xf32>
      %150 = arith.divf %149, %144 : vector<16x1xf32>
      %151 = vector.shape_cast %150 : vector<16x1xf32> to vector<16x1xf32>
      %152 = vector.broadcast %151 : vector<16x1xf32> to vector<16x128xf32>
      %c0_82 = arith.constant 0 : index
      %c0_83 = arith.constant 0 : index
      %153 = vector.load %arg7[%c0_82, %c0_83] : memref<16x128xf32, #tpu.memory_space<vmem>>, vector<16x128xf32>
      tpu.vector_store %arg7[%c0_82, %c0_83], %152 {strides = array<i32>} : memref<16x128xf32, #tpu.memory_space<vmem>>, vector<16x128xf32>,
    } else {
    }
    return
  }
  func.func @transform_0(%arg0: i32, %arg1: i32) -> (i32, i32) {
    %c0_i32 = arith.constant 0 : i32
    %c0_i32_0 = arith.constant 0 : i32
    return %arg0, %c0_i32 : i32, i32
  }
  func.func @transform_1(%arg0: i32, %arg1: i32) -> (i32, i32) {
    %c0_i32 = arith.constant 0 : i32
    %c0_i32_0 = arith.constant 0 : i32
    return %arg0, %c0_i32 : i32, i32
  }
  func.func @transform_2(%arg0: i32, %arg1: i32) -> (i32, i32) {
    %c0_i32 = arith.constant 0 : i32
    %c0_i32_0 = arith.constant 0 : i32
    return %arg0, %c0_i32 : i32, i32
  }
  func.func @transform_3(%arg0: i32, %arg1: i32) -> (i32, i32) {
    %c0_i32 = arith.constant 0 : i32
    %c0_i32_0 = arith.constant 0 : i32
    return %c0_i32, %arg1 : i32, i32
  }
  func.func @transform_4(%arg0: i32, %arg1: i32) -> (i32, i32) {
    %c0_i32 = arith.constant 0 : i32
    %c0_i32_0 = arith.constant 0 : i32
    return %c0_i32, %arg1 : i32, i32
  }
  func.func @transform_5(%arg0: i32, %arg1: i32) -> (i32, i32) {
    %c0_i32 = arith.constant 0 : i32
    %c0_i32_0 = arith.constant 0 : i32
    return %arg0, %c0_i32 : i32, i32
  }
}

</mosaic_0001>

<bundles_post_ra>
// kernel: tpu_custom_call.1
= control target key start
LH: loop header
LB: loop body
LE: loop exit
PB: predicated region body
PF: predicated region fallthrough
CT: control target
= control target key end

     0   :  { %s1786_s0 = inlined_call_operand.hbm [shape: f32[16,16], index: 0, kind: input, shape index: {}]   ;;  %s1787_s1 = inlined_call_operand.hbm [shape: bf16[16,32], index: 1, kind: input, shape index: {}]   ;;  %s1788_s2 = inlined_call_operand.hbm [shape: bf16[16,15], index: 2, kind: input, shape index: {}]   ;;  %s1789_s3 = inlined_call_operand.hbm [shape: bf16[32,256], index: 3, kind: input, shape index: {}]   ;;  %s1790_s4 = inlined_call_operand.hbm [shape: bf16[15,256], index: 4, kind: input, shape index: {}]   ;;  %s1791_s5 = inlined_call_operand.hbm [shape: f32[16,128], index: 5, kind: output, shape index: {}]  }
   0x1   :  { %1799 = sst [smem:[#allocation24_spill]] %s1787_s1 }
   0x2   :  { %1800 = sst [smem:[#allocation25_spill]] %s1789_s3 }
   0x3   :  { %10 = vsyncpa [#allocation9], 0 }
   0x4   :  { %11 = vsyncpa [#allocation12], 0 }
   0x5   :  { %12 = vsyncpa [#allocation15], 0 }
   0x6   :  { %14 = vsyncpa [#allocation15 + $0x1], 0 }
   0x7   :  { %15 = vsyncpa [#allocation10], 0  ;;  %s1467_s18 = smov 0   ;;  %s1469_s19 = smov 0  }
   0x8   :  { %s1471_s20 = smov 0   ;;  %s1473_s21 = smov 0  }
   0x9   :  { %s1475_s22 = smov 0   ;;  %s1477_s23 = smov 0  }
   0xa LB: > { %1801 = sst [smem:[#allocation22_spill]] %s1409_s22  ;;  %s1496_s24 = sadd.s32 4294967295, %s1413_s23   ;;  %s1413_s23 = sphi %s1477_s23, %s21_s23   ;;  %s1409_s22 = sphi %s1475_s22, %s1816_s22   ;;  %s1405_s21 = sphi %s1473_s21, %s1815_s21   ;;  %s1401_s20 = sphi %s1471_s20, %s1819_s20   ;;  %s1397_s19 = sphi %s1469_s19, %s1818_s19   ;;  %s1393_s18 = sphi %s1467_s18, %s1817_s18  }
   0xb   : > { %s118_s25 = sadd.s32 1, %s1401_s20  ;;  %p125_p0 = scmp.ne.s32.totalorder %s1401_s20, %s1397_s19 }
   0xc   : > { %p126_p1 = scmp.eq.s32.totalorder %s1413_s23, 0  ;;  %p131_p2 = scmp.ne.s32.totalorder %s1397_s19, %s1393_s18 }
   0xd   : > { %p1792_p3 = scmp.eq.s32.totalorder %s1496_s24, 0  ;;  %p978_p5 = scmp.ge.s32.totalorder %s1413_s23, 1 }
   0xe   : > { %p127_p4 = por %p126_p1, %p125_p0  ;;  %p194_p7 = scmp.lt.s32.totalorder %s1413_s23, 3 }
   0xf   : > { %p1507_p6 = por %p1792_p3, %p131_p2  ;;  %s1415_s28 = smov [#allocation11]  }
  0x10   : > { %p1512_p8 = pnand %p978_p5, %p194_p7  ;;  %s225_s29 = sshll.u32 %s1415_s28, 4  ;;  %s226_s29 = int_to_ptr.vmem [resolvable:$true] %s225_s29 }
  0x11   : > { %p1077_p10 = scmp.lt.s32.totalorder %s1413_s23, 2  ;;  %s30_s7 = sadd.s32 1, %s1409_s22 }
  0x12   : > { %p1057_p9 = pneg %p1512_p8  ;;  %s1204_s8 = scalar_lea.vmem %s226_s29, 128 }
  0x13   : > { %p1525_p12 = pnand %p1077_p10, %p127_p4  ;;  %p1205_p0 = scmp.ne.s32.totalorder %s226_s29, %s1204_s8 }
  0x14   : > { %p1521_p11 = pnand %p1057_p9, %p1792_p3  ;;  %p1212_p5 = scmp.lt.s32.totalorder %s226_s29, %s226_s29 }
  0x15   : > { %p1213_p7 = scmp.lt.s32.totalorder %s1204_s8, %s1204_s8 }
  0x16   : > { %p1195_p13 = pneg %p1521_p11 }
  0x17   : > { %p1214_p9 = por %p1213_p7, %p1212_p5 }
  0x18   : > { %p1207_p1 = pnand %p1205_p0, %p1195_p13 }
  0x1a   : > { %p1208_p2 = pneg %p1207_p1 }
  0x1c   : > { %p1215_p3 = pnand %p1214_p9, %p1208_p2 }
  0x1e   : > { %1218 = shalt.err (!%p1215_p3)
}
  0x1f   : > { %s1793_s9 = smov 64   ;;  %s1795_s10 = smov 4  }
  0x20   : > { %s1806_s1 = sld [smem:[#allocation24_spill]]  ;;  %p31_p3 = scmp.ge.s32.totalorder %s30_s7, 2 }
  0x21   : > { %s255_s13 = sand.u32 1, %s1413_s23   ;;  %s257_s14 = sand.u32 1, %s1401_s20  }
  0x22   : > { %s1821_s7 = smov (%p31_p3, %s30_s7), 0  ;;  %s983_s16 = sshll.u32 %s257_s14, 4 }
  0x23   : > { %1807 = sst [smem:[#allocation23_spill]] %s1821_s7  ;;  %s115_s15 = ssub.s32 %s1409_s22, %s1821_s7 }
  0x24   : > { %p116_p4 = scmp.eq.s32.totalorder %s115_s15, 0  ;;  %s984_s17 = sshll.u32 %s1409_s22, 6 }
  0x25   : > { %s259_s18 = scalar_lea.vmem [#allocation14], %s983_s16  ;;  %s1808_s3 = sld [smem:[#allocation25_spill]] }
  0x26   : > { %1063 = dma.hbm_to_vmem [thread:$0]  (!%p1521_p11), %s1806_s1, 128, %s226_s29, [#allocation12], %s1793_s9, %s1793_s9, %s1795_s10  }
  0x27   : > { %s265_s28 = sshll.u32 %s259_s18, 4  ;;  %s1560_s9 = scalar_lea.sflag [#allocation15], %s255_s13  ;;  %s266_s28 = int_to_ptr.vmem [resolvable:$true] %s265_s28 }
  0x28   : > { %s1555_s8 = scalar_select %p116_p4, %s1401_s20, %s118_s25  }
  0x29   : > { %p1221_p10 = pneg %p1525_p12  ;;  %s1232_s10 = scalar_lea.vmem %s266_s28, 256 }
  0x2a   : > { %p1233_p0 = scmp.ne.s32.totalorder %s266_s28, %s1232_s10  ;;  %s1418_s15 = smov [#allocation14]  }
  0x2b   : > { %s264_s29 = scalar_lea.hbm %s1808_s3, %s984_s17  ;;  %s1237_s16 = sshll.u32 %s1418_s15, 4  ;;  %s1238_s16 = int_to_ptr.vmem [resolvable:$false] %s1237_s16 }
  0x2c   : > { %p1235_p1 = pnand %p1233_p0, %p1221_p10  ;;  %s1239_s25 = scalar_lea.vmem %s1238_s16, 512 }
  0x2d   : > { %p1240_p5 = scmp.lt.s32.totalorder %s266_s28, %s1238_s16  ;;  %p1241_p7 = scmp.lt.s32.totalorder %s1239_s25, %s1232_s10 }
  0x2e   : > { %p1236_p2 = pneg %p1235_p1 }
  0x2f   : > { %p1242_p9 = por %p1241_p7, %p1240_p5 }
  0x31   : > { %p1243_p3 = pnand %p1242_p9, %p1236_p2 }
  0x33   : > { %1246 = shalt.err (!%p1243_p3)
}
  0x34   : > { %s1419_s18 = smov 128   ;;  %s1809_s13 = smov 4  }
  0x35   : > { %s1810_s11 = smov 64   ;;  %s985_s12 = sshll.u32 %s257_s14, 3 }
  0x36   : > { %1070 = dma.hbm_to_vmem [thread:$0]  (!%p1525_p12), %s264_s29, 256, %s266_s28, %s1560_s9, %s1419_s18, %s1810_s11, %s1809_s13  }
  0x37   : > { %s1578_s16 = scalar_lea.hbm %s1790_s4, %s984_s17  ;;  %s279_s10 = scalar_lea.vmem [#allocation16], %s985_s12 }
  0x38   : > { %s285_s25 = sshll.u32 %s279_s10, 4  ;;  %s1420_s3 = smov [#allocation8]   ;;  %s1590_s25 = int_to_ptr.vmem [resolvable:$true] %s285_s25 }
  0x39   : > { %s209_s7 = sshll.u32 %s1420_s3, 4  ;;  %s210_s7 = int_to_ptr.vmem [resolvable:$true] %s209_s7 }
  0x3a   : > { %s1258_s22 = scalar_lea.vmem %s210_s7, 256  ;;  %p1266_p2 = scmp.lt.s32.totalorder %s210_s7, %s210_s7 }
  0x3b   : > { %p1259_p4 = scmp.ne.s32.totalorder %s210_s7, %s1258_s22  ;;  %p1267_p5 = scmp.lt.s32.totalorder %s1258_s22, %s1258_s22 }
  0x3d   : > { %p1261_p0 = pnand %p1259_p4, %p1195_p13  ;;  %p1268_p7 = por %p1267_p5, %p1266_p2 }
  0x3f   : > { %p1262_p1 = pneg %p1261_p0 }
  0x41   : > { %p1269_p9 = pnand %p1268_p7, %p1262_p1 }
  0x43   : > { %1272 = shalt.err (!%p1269_p9)
}
  0x44   : > { %s1421_s14 = smov 8   ;;  %s1422_s3 = smov [#allocation13]  }
  0x45   : > { %1060 = dma.hbm_to_vmem [thread:$0]  (!%p1521_p11), %s1786_s0, 256, %s210_s7, [#allocation9], %s1419_s18, %s1419_s18, %s1421_s14  }
  0x46   : > { %s241_s28 = sshll.u32 %s1422_s3, 4  ;;  %s242_s28 = int_to_ptr.vmem [resolvable:$true] %s241_s28 }
  0x47   : > { %s1284_s29 = scalar_lea.vmem %s242_s28, 128  ;;  %p1292_p1 = scmp.lt.s32.totalorder %s242_s28, %s242_s28 }
  0x48   : > { %p1285_p3 = scmp.ne.s32.totalorder %s242_s28, %s1284_s29  ;;  %p1293_p2 = scmp.lt.s32.totalorder %s1284_s29, %s1284_s29 }
  0x4a   : > { %p1287_p4 = pnand %p1285_p3, %p1195_p13  ;;  %p1294_p5 = por %p1293_p2, %p1292_p1 }
  0x4c   : > { %p1288_p0 = pneg %p1287_p4 }
  0x4e   : > { %p1295_p7 = pnand %p1294_p5, %p1288_p0 }
  0x50   : > { %1298 = shalt.err (!%p1295_p7)
}
  0x51   : > { %1066 = dma.hbm_to_vmem [thread:$0]  (!%p1521_p11), %s1788_s2, 128, %s242_s28, [#allocation12], %s1810_s11, %s1810_s11, %s1809_s13  }
  0x52   : > { %s1312_s12 = scalar_lea.vmem %s1590_s25, 128  ;;  %s1423_s15 = smov [#allocation16]  }
  0x53   : > { %p1313_p13 = scmp.ne.s32.totalorder %s1590_s25, %s1312_s12  ;;  %s1317_s10 = sshll.u32 %s1423_s15, 4  ;;  %s1318_s10 = int_to_ptr.vmem [resolvable:$false] %s1317_s10 }
  0x54   : > { %s1319_s30 = scalar_lea.vmem %s1318_s10, 256  ;;  %p1320_p4 = scmp.lt.s32.totalorder %s1590_s25, %s1318_s10 }
  0x55   : > { %p1315_p9 = pnand %p1313_p13, %p1221_p10  ;;  %p1321_p0 = scmp.lt.s32.totalorder %s1319_s30, %s1312_s12 }
  0x57   : > { %p1316_p3 = pneg %p1315_p9  ;;  %p1322_p1 = por %p1321_p0, %p1320_p4 }
  0x59   : > { %p1323_p2 = pnand %p1322_p1, %p1316_p3 }
  0x5b   : > { %1326 = shalt.err (!%p1323_p2)
}
  0x5c   : > { %1073 = dma.hbm_to_vmem [thread:$0]  (!%p1525_p12), %s1578_s16, 128, %s1590_s25, %s1560_s9, %s1419_s18, %s1810_s11, %s1809_s13  }
  0x5d   : > { %297 = sbr.rel (%p1512_p8) target bundleno = 1624 (0x658), region = 40  ;;  %p1811_p11 = scmp.eq.s32.totalorder (!%p1512_p8), %s1496_s24, 0 }
  0x62   : > { %1376 = dma.done.wait (%p1811_p11), [#allocation9], 256   ;;  %p1812_p10 = pmov %p1811_p11 }
  0x64   : > { %1378 = vsyncadd (%p1812_p10), [#allocation9], 4294967040  ;;  %p1813_p5 = pmov %p1812_p10 }
  0x66   : > { %1380 = dma.done.wait (%p1813_p5), [#allocation12], 256   ;;  %p1814_p7 = pmov %p1813_p5 }
  0x67   : > { %s311_s6 = sand.u32 1, %s1496_s24   ;;  %s313_s9 = sand.u32 1, %s1397_s19  }
  0x68   : > { %1382 = vsyncadd (%p1814_p7), [#allocation12], 4294967040  ;;  %s1629_s18 = sshll.u32 %s313_s9, 4  ;;  %s312_s27 = scalar_lea.sflag [#allocation15], %s311_s6 }
  0x69   : > { %s315_s13 = scalar_lea.vmem [#allocation14], %s1629_s18 }
  0x6a   : > { %1384 = dma.done.wait (%p1507_p6), %s312_s27, 384  }
  0x6b   : > { %1386 = vsyncadd (%p1507_p6), %s312_s27, 4294966912  ;;  %s1636_s11 = sshll.u32 %s313_s9, 3  ;;  %p993_p8 = scmp.ne.s32.totalorder %s1405_s21, 0 }
  0x6c   : > { %s324_s16 = scalar_lea.vmem [#allocation16], %s1636_s11 }
  0x6d   : > { %359 = sbr.rel (%p993_p8) target bundleno = 259 (0x103), region = 64 }
  0x72   : > { %v360_v0 = vld [vmem:[#allocation8] sm:$0xff]  ;;  %vm362_vm0 = vcmask 130048   ;;  %v361_v1 = vld [vmem:[#allocation8 + $0x8] sm:$0xff]  ;;  %vm369_vm1 = vcmask 7168   ;;  %v1424_v3 = vmov 0.0  }
  0x73   : > { %v363_v2 = vsel %vm362_vm0, %v360_v0, -inf  ;;  %372 = vst.msk [vmem:[#allocation3] sm:$0xff] %vm369_vm1, %v1424_v3  ;;  %373 = vst.msk [vmem:[#allocation3 + $0x8] sm:$0xff] %vm369_vm1, %v1424_v3  ;;  %v366_v4 = vsel %vm362_vm0, %v361_v1, -inf }
  0x74   : > { %374 = vst.msk [vmem:[#allocation4] sm:$0xff] %vm369_vm1, %v1424_v3  ;;  %375 = vst.msk [vmem:[#allocation4 + $0x8] sm:$0xff] %vm369_vm1, %v1424_v3  ;;  %364 = vmax.xlane.f32.xlu0 %v363_v2 }
  0x75   : > { %376 = vst.msk [vmem:[#allocation5] sm:$0xff] %vm369_vm1, %v1424_v3  ;;  %377 = vst.msk [vmem:[#allocation5 + $0x8] sm:$0xff] %vm369_vm1, %v1424_v3 }
  0x76   : > { %378 = vst.msk [vmem:[#allocation6] sm:$0xff] %vm369_vm1, %v1424_v3  ;;  %379 = vst.msk [vmem:[#allocation6 + $0x8] sm:$0xff] %vm369_vm1, %v1424_v3 }
  0x77   : > { %380 = vst.msk [vmem:[#allocation7] sm:$0xff] %vm369_vm1, %v1424_v3  ;;  %381 = vst.msk [vmem:[#allocation7 + $0x8] sm:$0xff] %vm369_vm1, %v1424_v3 }
  0x78   : > { %367 = vmax.xlane.f32.xlu0 %v366_v4 }
  0xfd   : > { %v365_v5 = vpop.xlane.xlu0 %364 }
  0xfe   : > { %370 = vst.msk [vmem:[#allocation2] sm:$0xff] %vm369_vm1, %v365_v5 }
 0x101   : > { %v368_v6 = vpop.xlane.xlu0 %367 }
 0x102   : > { %371 = vst.msk [vmem:[#allocation2 + $0x8] sm:$0xff] %vm369_vm1, %v368_v6 }
 0x103 PF: > { %v1153_v7 = vld [vmem:[%s315_s13 + $0x8] sm:$0xff]   ;;  %v1425_v8 = vmov 0.0   ;;  %v1154_v9 = vld [vmem:[%s315_s13] sm:$0xff]   ;;  %vm470_vm2 = vcmask 1046528   ;;  %vm471_vm3 = vcmask 1047552   ;;  %v1426_v11 = vmov 65535  }
 0x104   : > { %1023 = vmatprep.subr.bf16.mxu0 %v1425_v8  ;;  %1031 = vmatprep.subr.bf16.mxu1 %v1425_v8  ;;  %v1155_v10 = vld [vmem:[%s324_s16] sm:$0xff]   ;;  %v472_v12 = vsel %vm470_vm2, 4294967295, %v1426_v11  ;;  %vm1427_vm4 = vmmov 0   ;;  %v1156_v14 = vld [vmem:[#allocation11] sm:$0xff]   ;;  %vm405_vm5 = vcmask 261120   ;;  %v1157_v16 = vld [vmem:[#allocation13] sm:$0xff]  }
 0x105   : > { %1024 = vmatpush3.bf16.msra.mxu0 %v1153_v7  ;;  %1027 = vmatprep.mubr.msk.bf16.mxu0 %vm1427_vm4, %v1425_v8  ;;  %v473_v13 = vsel %vm471_vm3, %v472_v12, 0  ;;  %vm466_vm6 = vcmask 121856   ;;  %v1428_v27 = vmov 0   ;;  %v520_v28 = vld [vmem:[#allocation2] sm:$0xff]  ;;  %vm560_vm7 = vcmask 7168   ;;  %v550_v53 = vld [vmem:[#allocation3] sm:$0xff] }
 0x106   : > { %1025 = vmatprep.subr.bf16.mxu0 %v1425_v8  ;;  %1033 = vmatprep.mubr.msk.bf16.mxu1 %vm1427_vm4, %v1425_v8  ;;  %v475_v15 = vand.u32 %v1155_v10, %v473_v13  ;;  %v551_v57 = vld [vmem:[#allocation3 + $0x8] sm:$0xff]  ;;  %v563_v58 = vld [vmem:[#allocation4] sm:$0xff]  ;;  %v577_v2 = vld [vmem:[#allocation5] sm:$0xff]  ;;  %p1001_p6 = scmp.ne.s32.totalorder %s1405_s21, 1 }
 0x107   : > { %1151 = vset.pattern.permute.xlu1 %v1428_v27  ;;  %1152 = vset.pattern.permute.xlu0 %v1428_v27  ;;  %v578_v5 = vld [vmem:[#allocation5 + $0x8] sm:$0xff]  ;;  %v587_v8 = vld [vmem:[#allocation6] sm:$0xff]  ;;  %v588_v11 = vld [vmem:[#allocation6 + $0x8] sm:$0xff]  ;;  %s1430_s21 = smov (!%p1001_p6), 15   ;;  %s1432_s26 = smov (!%p1001_p6), 113  }
 0x108   : > { %1032 = vmatpush3.bf16.msra.mxu1 %v475_v15 }
 0x109   : > { %1026 = vmatpush3.bf16.msra.mxu0 %v1154_v9  ;;  %v521_v31 = vld [vmem:[#allocation2 + $0x8] sm:$0xff] }
 0x10b   : > { %1034 = vmatmul.mubr.msk.bf16.vlgmr.msra.gmra.mxu1 %vm466_vm6, %v1157_v16  ;;  %v564_v16 = vld [vmem:[#allocation4 + $0x8] sm:$0xff] }
 0x10c   : > { %1028 = vmatmul.mubr.msk.bf16.vlgmr.msra.gmra.mxu0 %vm405_vm5, %v1156_v14  ;;  %v599_v14 = vld [vmem:[#allocation7] sm:$0xff] }
 0x1cb   : > { %v511_v19 = vpop.f32.mrf.mxu1 }
 0x1cc   : > { %v443_v17 = vpop.f32.mrf.mxu0  ;;  %v518_v43 = vmin.f32 %v511_v19, 1.0 }
 0x1cd   : > { %v450_v18 = vmul.f32 5.0, %v443_v17  ;;  %v1035_v21 = vpop.f32.mrf.mxu1 }
 0x1ce   : > { %v1029_v20 = vpop.f32.mrf.mxu0  ;;  %v600_v21 = vld [vmem:[#allocation7 + $0x8] sm:$0xff] }
 0x1cf   : > { %522 = vmax.xlane.f32.xlu0 %v450_v18  ;;  %v514_v24 = vpop.f32.mrf.mxu1  ;;  %v589_v47 = vmul.f32 %v518_v43, %v450_v18 }
 0x1d0   : > { %v446_v22 = vpop.f32.mrf.mxu0  ;;  %v519_v46 = vmin.f32 %v514_v24, 1.0 }
 0x1d1   : > { %v451_v23 = vmul.f32 5.0, %v446_v22  ;;  %v1036_v26 = vpop.f32.mrf.mxu1 }
 0x1d2   : > { %v1030_v25 = vpop.f32.mrf.mxu0 }
 0x1d3   : > { %524 = vmax.xlane.f32.xlu0 %v451_v23  ;;  %v590_v48 = vmul.f32 %v519_v46, %v451_v23 }
 0x258   : > { %v523_v29 = vpop.xlane.xlu0 %522 }
 0x259   : > { %v526_v30 = vmax.f32 %v520_v28, %v523_v29 }
 0x25b   : > { %v528_v32 = vsub.f32 %v520_v28, %v526_v30  ;;  %609 = vst.msk [vmem:[#allocation2] sm:$0xff] %vm560_vm7, %v526_v30  ;;  %536 = vperm.xlu1 %1151, %v526_v30  }
 0x25c   : > { %v525_v33 = vpop.xlane.xlu0 %524 }
 0x25d   : > { %v527_v34 = vmax.f32 %v521_v31, %v525_v33  ;;  %v530_v50 = vmul.f32 1.442695, %v528_v32 }
 0x25f   : > { %v529_v35 = vsub.f32 %v521_v31, %v527_v34  ;;  %610 = vst.msk [vmem:[#allocation2 + $0x8] sm:$0xff] %vm560_vm7, %v527_v34  ;;  %541 = vperm.xlu1 %1151, %v527_v34  }
 0x261   : > { %v532_v51 = vmul.f32 1.442695, %v529_v35 }
 0x2d6   : > { %v537_v36 = vpop.permute.xlu1 %536 }
 0x2d7   : > { %v544_v37 = vsub.f32 %v450_v18, %v537_v36 }
 0x2d9   : > { %v546_v38 = vmul.f32 1.442695, %v544_v37 }
 0x2da   : > { %v542_v39 = vpop.permute.xlu1 %541 }
 0x2db   : > { %1158 = vpow2.f32 %v546_v38  ;;  %v545_v40 = vsub.f32 %v451_v23, %v542_v39 }
 0x2dd   : > { %v548_v41 = vmul.f32 1.442695, %v545_v40 }
 0x2df   : > { %1160 = vpow2.f32 %v548_v41 }
 0x2e0   : > { %1162 = vpow2.f32 %v530_v50 }
 0x2e1   : > { %1164 = vpow2.f32 %v532_v51 }
 0x2e8   : > { %v1159_v42 = vpop.eup %1158 }
 0x2e9   : > { %554 = vadd.xlane.f32.xlu0 %v1159_v42  ;;  %v567_v44 = vmul.f32 %v1159_v42, %v518_v43 }
 0x2ec   : > { %v1161_v45 = vpop.eup %1160 }
 0x2ed   : > { %569 = vadd.xlane.f32.xlu0 %v567_v44  ;;  %556 = vadd.xlane.f32.xlu1 %v1161_v45  ;;  %v568_v49 = vmul.f32 %v1161_v45, %v519_v46  ;;  %v1163_v52 = vpop.eup %1162 }
 0x2ee   : > { %v552_v54 = vmul.f32 %v1163_v52, %v550_v53  ;;  %v1165_v55 = vpop.eup %1164  ;;  %v565_v61 = vmul.f32 %v1163_v52, %v563_v58 }
 0x2ef   : > { %v553_v60 = vmul.f32 %v1165_v55, %v551_v57 }
 0x2f1   : > { %579 = vadd.xlane.f32.xlu0 %v450_v18  ;;  %v566_v18 = vmul.f32 %v1165_v55, %v564_v16 }
 0x2f5   : > { %581 = vadd.xlane.f32.xlu0 %v451_v23 }
 0x2f9   : > { %591 = vadd.xlane.f32.xlu0 %v589_v47 }
 0x2fd   : > { %593 = vadd.xlane.f32.xlu0 %v590_v48 }
 0x301   : > { %601 = vadd.xlane.f32.xlu0 %v518_v43 }
 0x305   : > { %571 = vadd.xlane.f32.xlu0 %v568_v49 }
 0x309   : > { %603 = vadd.xlane.f32.xlu0 %v519_v46 }
 0x372   : > { %v555_v56 = vpop.xlane.xlu0 %554 }
 0x373   : > { %v558_v59 = vadd.f32 %v555_v56, %v552_v54 }
 0x375   : > { %561 = vst.msk [vmem:[#allocation3] sm:$0xff] %vm560_vm7, %v558_v59 }
 0x376   : > { %v557_v62 = vpop.xlane.xlu1 %556  ;;  %v570_v63 = vpop.xlane.xlu0 %569 }
 0x377   : > { %v559_v0 = vadd.f32 %v557_v62, %v553_v60  ;;  %v573_v1 = vadd.f32 %v570_v63, %v565_v61 }
 0x379   : > { %562 = vst.msk [vmem:[#allocation3 + $0x8] sm:$0xff] %vm560_vm7, %v559_v0  ;;  %575 = vst.msk [vmem:[#allocation4] sm:$0xff] %vm560_vm7, %v573_v1 }
 0x37a   : > { %v580_v3 = vpop.xlane.xlu0 %579 }
 0x37b   : > { %v583_v4 = vadd.f32 %v580_v3, %v577_v2 }
 0x37d   : > { %585 = vst.msk [vmem:[#allocation5] sm:$0xff] %vm560_vm7, %v583_v4 }
 0x37e   : > { %v582_v6 = vpop.xlane.xlu0 %581 }
 0x37f   : > { %v584_v7 = vadd.f32 %v582_v6, %v578_v5 }
 0x381   : > { %586 = vst.msk [vmem:[#allocation5 + $0x8] sm:$0xff] %vm560_vm7, %v584_v7 }
 0x382   : > { %v592_v9 = vpop.xlane.xlu0 %591 }
 0x383   : > { %v595_v10 = vadd.f32 %v592_v9, %v587_v8 }
 0x385   : > { %597 = vst.msk [vmem:[#allocation6] sm:$0xff] %vm560_vm7, %v595_v10 }
 0x386   : > { %v594_v12 = vpop.xlane.xlu0 %593 }
 0x387   : > { %v596_v13 = vadd.f32 %v594_v12, %v588_v11 }
 0x389   : > { %598 = vst.msk [vmem:[#allocation6 + $0x8] sm:$0xff] %vm560_vm7, %v596_v13 }
 0x38a   : > { %v602_v15 = vpop.xlane.xlu0 %601 }
 0x38b   : > { %v605_v17 = vadd.f32 %v602_v15, %v599_v14 }
 0x38d   : > { %607 = vst.msk [vmem:[#allocation7] sm:$0xff] %vm560_vm7, %v605_v17 }
 0x38e   : > { %v572_v19 = vpop.xlane.xlu0 %571 }
 0x38f   : > { %v574_v20 = vadd.f32 %v572_v19, %v566_v18 }
 0x391   : > { %576 = vst.msk [vmem:[#allocation4 + $0x8] sm:$0xff] %vm560_vm7, %v574_v20  ;;  %614 = sbr.rel (%p1001_p6) target bundleno = 1608 (0x648), region = 68 }
 0x392   : > { %v604_v22 = vpop.xlane.xlu0 %603 }
 0x393   : > { %v606_v23 = vadd.f32 %v604_v22, %v600_v21 }
 0x395   : > { %608 = vst.msk [vmem:[#allocation7 + $0x8] sm:$0xff] %vm560_vm7, %v606_v23 }
 0x396   : > { %v1675_v24 = vld [vmem:[#allocation2] sm:$0xff]  ;;  %v1015_v25 = vld [vmem:[#allocation11] sm:$0xff]   ;;  %v1429_v26 = vmov 0   ;;  %v1678_v29 = vld [vmem:[#allocation2 + $0x8] sm:$0xff]  ;;  %v1431_v49 = vmov 0.0  }
 0x397   : > { %1166 = vset.pattern.permute.xlu1 %v1429_v26  ;;  %v1016_v27 = vunpack.c.l.bf16 %v1015_v25  ;;  %v1017_v28 = vunpack.c.h.bf16 %v1015_v25  ;;  %v1011_v32 = vld [vmem:[#allocation13] sm:$0xff]   ;;  %v1695_v39 = vld [vmem:[#allocation8] sm:$0xff]  ;;  %v1698_v42 = vld [vmem:[#allocation8 + $0x8] sm:$0xff]  ;;  %v659_v46 = vsub.f32 0.0, %v1675_v24  ;;  %v660_v59 = vsub.f32 0.0, %v1678_v29 }
 0x398   : > { %691 = vperm.xlu1 %1166, %v1675_v24   ;;  %v1683_v35 = vunpack.c.l.bf16 %v1011_v32  ;;  %v1687_v37 = vunpack.c.h.bf16 %v1011_v32  ;;  %v753_v63 = vld [vmem:[#allocation5] sm:$0xff]  ;;  %v747_v11 = vld [vmem:[#allocation6] sm:$0xff] }
 0x399   : > { %v627_v30 = vmul.f32 %v1016_v27, %v1016_v27  ;;  %v628_v31 = vmul.f32 %v1017_v28, %v1017_v28  ;;  %v661_v48 = vmul.f32 1.442695, %v659_v46  ;;  %v761_v1 = vld [vmem:[#allocation7] sm:$0xff]  ;;  %v663_v3 = vmul.f32 1.442695, %v660_v59  ;;  %v669_v27 = vld [vmem:[#allocation4] sm:$0xff] }
 0x39a   : > { %v637_v36 = vsel %vm466_vm6, %v1683_v35, 0.0  ;;  %v640_v38 = vsel %vm466_vm6, %v1687_v37, 0.0  ;;  %vm683_vm8 = vcmp.eq.f32.partialorder %v1683_v35, 0.0  ;;  %vm684_vm9 = vcmp.eq.f32.partialorder %v1687_v37, 0.0  ;;  %v657_v16 = vld [vmem:[#allocation3] sm:$0xff] }
 0x39b   : > { %v629_v33 = vsel %vm405_vm5, %v627_v30, 0.0  ;;  %v632_v34 = vsel %vm405_vm5, %v628_v31, 0.0  ;;  %v1004_v50 = vsel %vm683_vm8, 1.0, %v1431_v49  ;;  %v1005_v55 = vsel %vm684_vm9, 1.0, %v1431_v49 }
 0x39c   : > { %696 = vperm.xlu1 %1166, %v1678_v29   ;;  %630 = vadd.xlane.f32.xlu0 %v629_v33 }
 0x3a0   : > { %633 = vadd.xlane.f32.xlu0 %v632_v34 }
 0x3a4   : > { %638 = vadd.xlane.f32.xlu0 %v637_v36 }
 0x3ba   : > { %715 = vrot.lane.b32.xlu0 %v1675_v24, %s1430_s21 }
 0x3be   : > { %717 = vrot.lane.b32.xlu0 %v1678_v29, %s1430_s21 }
 0x3c0   : > { %641 = vadd.xlane.f32.xlu1 %v640_v38 }
 0x413   : > { %v692_v40 = vpop.permute.xlu1 %691 }
 0x414   : > { %v699_v41 = vsub.f32 %v1695_v39, %v692_v40  ;;  %v658_v40 = vld [vmem:[#allocation3 + $0x8] sm:$0xff] }
 0x416   : > { %v701_v43 = vmul.f32 1.442695, %v699_v41 }
 0x417   : > { %v697_v44 = vpop.permute.xlu1 %696 }
 0x418   : > { %1169 = vpow2.f32 %v701_v43  ;;  %v700_v45 = vsub.f32 %v1698_v42, %v697_v44 }
 0x41a   : > { %v703_v47 = vmul.f32 1.442695, %v700_v45  ;;  %v754_v45 = vld [vmem:[#allocation5 + $0x8] sm:$0xff] }
 0x41c   : > { %1171 = vpow2.f32 %v703_v47  ;;  %v762_v47 = vld [vmem:[#allocation7 + $0x8] sm:$0xff] }
 0x41d   : > { %1173 = vpow2.f32 %v661_v48 }
 0x425   : > { %v1170_v51 = vpop.eup %1169  ;;  %v631_v52 = vpop.xlane.xlu0 %630 }
 0x426   : > { %v705_v53 = vmul.f32 %v1170_v51, %v1004_v50  ;;  %v635_v54 = vmul.f32 5.0, %v631_v52  ;;  %v670_v50 = vld [vmem:[#allocation4 + $0x8] sm:$0xff] }
 0x428   : > { %v707_v56 = vsel %vm466_vm6, %v705_v53, 0.0  ;;  %v651_v57 = vsub.f32 %v635_v54, %v1675_v24  ;;  %v755_v6 = vsub.f32 %v753_v63, %v635_v54 }
 0x429   : > { %v1172_v58 = vpop.eup %1171  ;;  %708 = vadd.xlane.f32.xlu0 %v707_v56  ;;  %v634_v60 = vpop.xlane.xlu0 %633 }
 0x42a   : > { %v653_v61 = vmul.f32 1.442695, %v651_v57  ;;  %v706_v62 = vmul.f32 %v1172_v58, %v1005_v55  ;;  %v636_v4 = vmul.f32 5.0, %v634_v60  ;;  %v1174_v5 = vpop.eup %1173 }
 0x42b   : > { %v665_v15 = vmul.f32 44.0, %v1174_v5 }
 0x42c   : > { %1175 = vpow2.f32 %v653_v61  ;;  %v710_v0 = vsel %vm466_vm6, %v706_v62, 0.0  ;;  %v652_v12 = vsub.f32 %v636_v4, %v1678_v29  ;;  %v756_v55 = vsub.f32 %v754_v45, %v636_v4 }
 0x42d   : > { %711 = vadd.xlane.f32.xlu1 %v710_v0  ;;  %v639_v2 = vpop.xlane.xlu0 %638  ;;  %1177 = vpow2.f32 %v663_v3  ;;  %v667_v23 = vsub.f32 %v657_v16, %v665_v15 }
 0x42e   : > { %vm643_vm10 = vcmp.gt.f32.partialorder %v639_v2, 0.0  ;;  %v655_v21 = vmul.f32 1.442695, %v652_v12 }
 0x42f   : > { %v1002_v7 = vsel %vm643_vm10, 1.0, %v1431_v49 }
 0x430   : > { %v1711_v8 = vsub.f32 1.0, %v1002_v7  ;;  %v749_v9 = vmul.f32 %v1002_v7, %v635_v54  ;;  %v763_v10 = vsub.f32 %v761_v1, %v1002_v7  ;;  %1179 = vpow2.f32 %v655_v21  ;;  %v748_v54 = vld [vmem:[#allocation6 + $0x8] sm:$0xff] }
 0x432   : > { %v765_v13 = vmul.f32 211.0, %v1711_v8  ;;  %v793_v14 = vadd.f32 %v1711_v8, %v639_v2  ;;  %v751_v17 = vsub.f32 %v747_v11, %v749_v9  ;;  %v757_v18 = vmul.f32 %v755_v6, %v1711_v8 }
 0x433   : > { %v713_v11 = vsub.f32 1.0, %v1711_v8 }
 0x434   : > { %v767_v19 = vadd.f32 %v765_v13, %v763_v10  ;;  %v1717_v20 = vadd.f32 %v757_v18, %v751_v17 }
 0x436   : > { %v795_v22 = vmul.f32 0.05, %v767_v19 }
 0x438   : > { %v1719_v25 = vadd.f32 %v795_v22, %v793_v14 }
 0x439   : > { %v1176_v26 = vpop.eup %1175 }
 0x43a   : > { %v671_v28 = vmul.f32 %v1176_v26, %v1002_v7  ;;  %v675_v30 = vsub.f32 %v667_v23, %v1176_v26  ;;  %v1178_v33 = vpop.eup %1177 }
 0x43b   : > { %v666_v38 = vmul.f32 44.0, %v1178_v33 }
 0x43c   : > { %v673_v31 = vsub.f32 %v669_v27, %v671_v28  ;;  %v677_v32 = vmul.f32 %v675_v30, %v1711_v8 }
 0x43d   : > { %v668_v41 = vsub.f32 %v658_v40, %v666_v38  ;;  %v1180_v43 = vpop.eup %1179  ;;  %v769_v40 = vmul.f32 %v1683_v35, %v1695_v39 }
 0x43e   : > { %v679_v34 = vadd.f32 %v677_v32, %v673_v31 }
 0x43f   : > { %v676_v46 = vsub.f32 %v668_v41, %v1180_v43 }
 0x440   : > { %v681_v36 = vsub.f32 %v667_v23, %v679_v34 }
 0x442   : > { %733 = vrot.lane.b32.xlu1 %v681_v36, %s1430_s21  ;;  %v770_v36 = vmul.f32 %v1687_v37, %v1698_v42  ;;  %v1433_v37 = vmov 15  }
 0x443   : > { %1167 = vset.pattern.permute.xlu1 %v1433_v37  ;;  %1168 = vset.pattern.permute.xlu0 %v1433_v37 }
 0x444   : > { %v774_v38 = vsel %vm466_vm6, %v770_v36, 0.0 }
 0x449   : > { %v642_v44 = vpop.xlane.xlu1 %641 }
 0x44a   : > { %vm644_vm11 = vcmp.gt.f32.partialorder %v642_v44, 0.0 }
 0x44b   : > { %v1003_v48 = vsel %vm644_vm11, 1.0, %v1431_v49 }
 0x44c   : > { %v1724_v51 = vsub.f32 1.0, %v1003_v48  ;;  %v672_v52 = vmul.f32 %v1180_v43, %v1003_v48  ;;  %v750_v53 = vmul.f32 %v1003_v48, %v636_v4  ;;  %v764_v56 = vsub.f32 %v762_v47, %v1003_v48  ;;  %v716_v4 = vpop.permute.xlu0 %715 }
 0x44d   : > { %v721_v5 = vsub.f32 %v1695_v39, %v716_v4  ;;  %v781_v43 = vmul.f32 0.05, %v1717_v20 }
 0x44e   : > { %v766_v57 = vmul.f32 211.0, %v1724_v51  ;;  %v674_v58 = vsub.f32 %v670_v50, %v672_v52  ;;  %v678_v59 = vmul.f32 %v676_v46, %v1724_v51  ;;  %v752_v60 = vsub.f32 %v748_v54, %v750_v53 }
 0x44f   : > { %v758_v61 = vmul.f32 %v756_v55, %v1724_v51  ;;  %v794_v49 = vadd.f32 %v1724_v51, %v642_v44  ;;  %v723_v6 = vmul.f32 1.442695, %v721_v5  ;;  %v714_v21 = vsub.f32 1.0, %v1724_v51 }
 0x450   : > { %v768_v62 = vadd.f32 %v766_v57, %v764_v56  ;;  %v680_v63 = vadd.f32 %v678_v59, %v674_v58  ;;  %v718_v7 = vpop.permute.xlu0 %717  ;;  %v777_v55 = vmul.f32 %v1711_v8, %v1695_v39 }
 0x451   : > { %v760_v0 = vadd.f32 %v758_v61, %v752_v60  ;;  %1181 = vpow2.f32 %v723_v6  ;;  %v722_v9 = vsub.f32 %v1698_v42, %v718_v7 }
 0x452   : > { %v796_v1 = vmul.f32 0.05, %v768_v62  ;;  %v682_v2 = vsub.f32 %v668_v41, %v680_v63  ;;  %v771_v41 = vsel %vm466_vm6, %v769_v40, 0.0  ;;  %v778_v62 = vmul.f32 %v1724_v51, %v1698_v42 }
 0x453   : > { %v725_v10 = vmul.f32 1.442695, %v722_v9  ;;  %v782_v44 = vmul.f32 0.05, %v760_v0 }
 0x454   : > { %v798_v3 = vadd.f32 %v796_v1, %v794_v49  ;;  %735 = vrot.lane.b32.xlu1 %v682_v2, %s1430_s21 }
 0x455   : > { %1183 = vpow2.f32 %v725_v10 }
 0x45e   : > { %v1182_v12 = vpop.eup %1181 }
 0x45f   : > { %v727_v15 = vmul.f32 %v1182_v12, %v713_v11 }
 0x462   : > { %v1184_v22 = vpop.eup %1183 }
 0x463   : > { %v728_v23 = vmul.f32 %v1184_v22, %v714_v21 }
 0x4b2   : > { %v709_v13 = vpop.xlane.xlu0 %708 }
 0x4b3   : > { %v729_v16 = vadd.f32 %v727_v15, %v709_v13 }
 0x4b6   : > { %v712_v14 = vpop.xlane.xlu1 %711 }
 0x4b7   : > { %v730_v26 = vadd.f32 %v728_v23, %v712_v14 }
 0x4ba   : > { %v734_v17 = vpop.permute.xlu1 %733 }
 0x4bb   : > { %v739_v18 = vadd.f32 %v734_v17, %v729_v16 }
 0x4bd   : > { %v741_v19 = vadd.f32 1e-12, %v739_v18 }
 0x4bf   : > { %1185 = vlog2.f32 %v741_v19 }
 0x4c6   : > { %v736_v27 = vpop.permute.xlu1 %735 }
 0x4c7   : > { %v740_v28 = vadd.f32 %v736_v27, %v730_v26 }
 0x4c9   : > { %v742_v30 = vadd.f32 1e-12, %v740_v28 }
 0x4cb   : > { %1187 = vlog2.f32 %v742_v30 }
 0x4cc   : > { %v1186_v31 = vpop.eup %1185 }
 0x4cd   : > { %v744_v32 = vmul.f32 0.6931472, %v1186_v31 }
 0x4cf   : > { %801 = vrot.lane.b32.xlu0 %v744_v32, %s1432_s26 }
 0x4d8   : > { %v1188_v33 = vpop.eup %1187 }
 0x4d9   : > { %v746_v34 = vmul.f32 0.6931472, %v1188_v33 }
 0x4db   : > { %803 = vrot.lane.b32.xlu1 %v746_v34, %s1432_s26 }
 0x4ee   : > { %775 = vadd.xlane.f32.xlu0 %v774_v38 }
 0x4ff   : > { %772 = vadd.xlane.f32.xlu1 %v771_v41 }
 0x504   : > { %827 = vrot.lane.b32.xlu0 %v798_v3, %s1430_s21 }
 0x510   : > { %825 = vrot.lane.b32.xlu1 %v1719_v25, %s1430_s21 }
 0x514   : > { %785 = vrot.lane.b32.xlu1 %v781_v43, %s1430_s21 }
 0x518   : > { %787 = vrot.lane.b32.xlu1 %v782_v44, %s1430_s21 }
 0x541   : > { %v802_v45 = vpop.permute.xlu0 %801 }
 0x542   : > { %v807_v35 = vadd.f32 %v802_v45, %v1675_v24 }
 0x544   : > { %v809_v46 = vmul.f32 %v807_v35, %v1719_v25 }
 0x546   : > { %813 = vrot.lane.b32.xlu1 %v809_v46, %s1430_s21 }
 0x54d   : > { %v804_v47 = vpop.permute.xlu1 %803 }
 0x54e   : > { %v808_v48 = vadd.f32 %v804_v47, %v1678_v29 }
 0x550   : > { %v810_v50 = vmul.f32 %v808_v48, %v798_v3 }
 0x552   : > { %815 = vrot.lane.b32.xlu1 %v810_v50, %s1430_s21 }
 0x577   : > { %v776_v54 = vpop.xlane.xlu0 %775 }
 0x578   : > { %v780_v63 = vadd.f32 %v778_v62, %v776_v54 }
 0x57b   : > { %v828_v25 = vpop.permute.xlu0 %827 }
 0x588   : > { %v773_v20 = vpop.xlane.xlu1 %772 }
 0x589   : > { %v779_v24 = vadd.f32 %v777_v55, %v773_v20 }
 0x58c   : > { %v826_v52 = vpop.permute.xlu1 %825 }
 0x58d   : > { %1189 = vrcp.f32 %v826_v52 }
 0x58e   : > { %1191 = vrcp.f32 %v828_v25 }
 0x590   : > { %v786_v53 = vpop.permute.xlu1 %785 }
 0x591   : > { %v791_v57 = vadd.f32 %v786_v53, %v779_v24 }
 0x594   : > { %v788_v56 = vpop.permute.xlu1 %787 }
 0x595   : > { %v792_v0 = vadd.f32 %v788_v56, %v780_v63 }
 0x59a   : > { %v1190_v29 = vpop.eup %1189 }
 0x59b   : > { %v1192_v39 = vpop.eup %1191 }
 0x5b8   : > { %v814_v58 = vpop.permute.xlu1 %813 }
 0x5b9   : > { %v819_v59 = vsub.f32 %v791_v57, %v814_v58 }
 0x5bb   : > { %v821_v60 = vmul.f32 -1.0, %v819_v59 }
 0x5bd   : > { %v832_v61 = vmul.f32 %v1190_v29, %v821_v60 }
 0x5bf   : > { %837 = vperm.xlu1 %1167, %v832_v61  }
 0x5c4   : > { %v816_v49 = vpop.permute.xlu1 %815 }
 0x5c5   : > { %v820_v1 = vsub.f32 %v792_v0, %v816_v49 }
 0x5c7   : > { %v822_v2 = vmul.f32 -1.0, %v820_v1 }
 0x5c9   : > { %v834_v8 = vmul.f32 %v1192_v39, %v822_v2 }
 0x5cb   : > { %842 = vperm.xlu0 %1168, %v834_v8  }
 0x63a   : > { %v838_v3 = vpop.permute.xlu1 %837 }
 0x63b   : > { %845 = vst [vmem:[#allocation17] sm:$0xff] %v838_v3 }
 0x646   : > { %v843_v4 = vpop.permute.xlu0 %842 }
 0x647   : > { %846 = vst [vmem:[#allocation17 + $0x8] sm:$0xff] %v843_v4 }
 0x648 PF: > { %p1081_p12 = scmp.eq.s32.totalorder %s1496_s24, 1  ;;  %s1434_s25 = smov [#allocation17]  }
 0x649   : > { %s856_s14 = sshll.u32 %s1434_s25, 4  ;;  %s857_s14 = int_to_ptr.vmem [resolvable:$true] %s856_s14 }
 0x64a   : > { %s1327_s1 = scalar_lea.vmem %s857_s14, 256  ;;  %p1334_p4 = scmp.lt.s32.totalorder %s857_s14, %s857_s14 }
 0x64b   : > { %p1328_p13 = scmp.ne.s32.totalorder %s857_s14, %s1327_s1  ;;  %p1335_p0 = scmp.lt.s32.totalorder %s1327_s1, %s1327_s1 }
 0x64d   : > { %p1329_p9 = pnand %p1328_p13, %p1081_p12  ;;  %p1336_p1 = por %p1335_p0, %p1334_p4 }
 0x64f   : > { %p1330_p3 = pneg %p1329_p9 }
 0x651   : > { %p1337_p2 = pnand %p1336_p1, %p1330_p3 }
 0x653   : > { %1340 = shalt.err (!%p1337_p2)
}
 0x654   : > { %s1435_s17 = smov 128   ;;  %s1436_s3 = smov 8  }
 0x655   : > { %1054 = dma.vmem_to_hbm [thread:$0]  (%p1081_p12), %s857_s14, 256, %s1791_s5, [#allocation10], %s1435_s17, %s1435_s17, %s1436_s3  }
 0x656   : > { %1388 = dma.done.wait (%p1081_p12), [#allocation10], 256  }
 0x657   : > { %1390 = vsyncadd (%p1081_p12), [#allocation10], 4294967040 }
 0x658 PF: > { %s21_s23 = sadd.s32 1, %s1413_s23   ;;  %s1815_s21 = sld [smem:[#allocation22_spill]] }
 0x659   : > { %p18_p11 = scmp.ge.s32.totalorder %s21_s23, 4   ;;  %s1816_s22 = sld [smem:[#allocation23_spill]] }
 0x65a   : > { %s1817_s18 = smov %s1397_s19  ;;  %s1818_s19 = smov %s1401_s20 }
 0x65b   : > { %s1819_s20 = smov %s1555_s8  ;;  %20 = sbr.rel (!%p18_p11) target bundleno = 10 (0xa), region = 113 }
 0x660   :  { %872 = vsyncpa [#allocation9], 1 }
 0x661   :  { %874 = vsyncpa [#allocation9 + $0x1], 1 }
 0x662   :  { %875 = vsyncpa [#allocation12], 1 }
 0x663   :  { %876 = vsyncpa [#allocation15], 1 }
 0x664   :  { %878 = vsyncpa [#allocation15 + $0x1], 1 }
 0x665   :  { %879 = vsyncpa [#allocation10], 1 }
 0x666   :  { %881 = vsyncpa [#allocation10 + $0x1], 1 }

</bundles_post_ra>
